<compile_context>
chip_gen: v5e
topology: v5e:2x2
jax: 0.10.0
libtpu: 0.0.40
codegen_flags: <defaults>
</compile_context>

<pallas_src>
import functools

import numpy as np
import jax
import jax.numpy as jnp
from jax.experimental import pallas as pl
from jax.experimental.pallas import tpu as pltpu


OUT_PAD = 128   # lane-dense padding for the final (32 -> 1) layer


# ----------------------------------------------------------------------------
# Pallas kernel: one batch tile of the whole forward pass.
# ----------------------------------------------------------------------------
def _mlp_kernel(x_ref, w1_ref, b1_ref, w2_ref, b2_ref, w3_ref, b3_ref,
                w4_ref, b4_ref, out_ref):
    dot = functools.partial(jnp.dot, preferred_element_type=jnp.float32)

    # fc1 + relu : (TILE_B, D) @ (D, 128)
    x = x_ref[...].astype(jnp.bfloat16)
    h = jnp.maximum(dot(x, w1_ref[...]) + b1_ref[...], 0.0)

    # dropout1 (p=0.5): identity in eval mode
    # TODO(synk): training-mode dropout (RNG mask) intentionally not applied.

    # fc2 + relu : (TILE_B, 128) @ (128, 64)
    h = jnp.maximum(dot(h.astype(jnp.bfloat16), w2_ref[...]) + b2_ref[...], 0.0)

    # dropout2 (p=0.5): identity in eval mode

    # fc3 + relu : (TILE_B, 64) @ (64, 32)
    h = jnp.maximum(dot(h.astype(jnp.bfloat16), w3_ref[...]) + b3_ref[...], 0.0)

    # output layer, padded to 128 lanes for a lane-dense store, + sigmoid
    logits = dot(h.astype(jnp.bfloat16), w4_ref[...]) + b4_ref[...]   # (TILE_B, 128)
    out_ref[...] = pl.reciprocal(1.0 + jnp.exp(-logits), approx=True)


# ----------------------------------------------------------------------------
# Wrapper
# ----------------------------------------------------------------------------
def mlp_forward(x, params, *, tile_b=8):
    B, D = x.shape
    b_pad = pl.cdiv(B, tile_b) * tile_b
    if b_pad != B:
        x = jnp.pad(x, ((0, b_pad - B), (0, 0)))

    # PyTorch Linear weights are (out, in); transpose to (in, out) and cast the
    # MXU operands to bf16 (accumulation stays f32 inside the kernel).
    w1 = params["fc1_w"].T.astype(jnp.bfloat16)            # (D, 128)
    b1 = params["fc1_b"].reshape(1, 128).astype(jnp.float32)
    w2 = params["fc2_w"].T.astype(jnp.bfloat16)            # (128, 64)
    b2 = params["fc2_b"].reshape(1, 64).astype(jnp.float32)
    w3 = params["fc3_w"].T.astype(jnp.bfloat16)            # (64, 32)
    b3 = params["fc3_b"].reshape(1, 32).astype(jnp.float32)

    # Pad the (32 -> 1) output layer to 128 lanes (column 0 is the real one).
    w4 = jnp.zeros((32, OUT_PAD), jnp.float32)
    w4 = w4.at[:, 0].set(params["out_w"].reshape(32)).astype(jnp.bfloat16)
    b4 = jnp.zeros((1, OUT_PAD), jnp.float32)
    b4 = b4.at[0, 0].set(params["out_b"].reshape(())[()])

    full_vmem = pl.BlockSpec(memory_space=pltpu.MemorySpace.VMEM)

    out_padded = pl.pallas_call(
        _mlp_kernel,
        out_shape=jax.ShapeDtypeStruct((b_pad, OUT_PAD), jnp.float32),
        grid=(b_pad // tile_b,),
        in_specs=[
            pl.BlockSpec((tile_b, D), lambda i: (i, 0)),   # x tile
            full_vmem, full_vmem,                          # w1, b1
            full_vmem, full_vmem,                          # w2, b2
            full_vmem, full_vmem,                          # w3, b3
            full_vmem, full_vmem,                          # w4, b4
        ],
        out_specs=pl.BlockSpec((tile_b, OUT_PAD), lambda i: (i, 0)),
        compiler_params=pltpu.CompilerParams(
            dimension_semantics=("parallel",),
        ),
    )(x, w1, b1, w2, b2, w3, b3, w4, b4)

    return out_padded[:B, :1]


# ----------------------------------------------------------------------------
# Pure-JAX reference mirroring the PyTorch forward (for validation)
# ----------------------------------------------------------------------------
def reference_forward(x, p):
    h = jax.nn.relu(x @ p["fc1_w"].T + p["fc1_b"])
    h = jax.nn.relu(h @ p["fc2_w"].T + p["fc2_b"])
    h = jax.nn.relu(h @ p["fc3_w"].T + p["fc3_b"])
    return jax.nn.sigmoid(h @ p["out_w"].T + p["out_b"])


# ----------------------------------------------------------------------------
if __name__ == "__main__":
    B, input_dim = 16, 64

    key = jax.random.PRNGKey(0)
    keys = jax.random.split(key, 9)

    def u(k, shape):
        return jax.random.uniform(k, shape, jnp.float32, -0.1, 0.1)

    params = {
        "fc1_w": u(keys[0], (128, input_dim)), "fc1_b": u(keys[1], (128,)),
        "fc2_w": u(keys[2], (64, 128)),        "fc2_b": u(keys[3], (64,)),
        "fc3_w": u(keys[4], (32, 64)),         "fc3_b": u(keys[5], (32,)),
        "out_w": u(keys[6], (1, 32)),          "out_b": u(keys[7], (1,)),
    }
    x = jax.random.normal(keys[8], (B, input_dim), jnp.float32)

    y = jax.block_until_ready(mlp_forward(x, params))
    y_ref = jax.block_until_ready(reference_forward(x, params))

    assert y.shape == (B, 1)
    # bf16 MXU operands -> relaxed tolerance vs. the f32 reference.
    np.testing.assert_allclose(np.asarray(y), np.asarray(y_ref),
                               rtol=2e-2, atol=2e-2)
    print("KERNEL_OK")
</pallas_src>

<mosaic_0001>
module attributes {stable_mosaic.version = 11 : i64} {
  func.func @_mlp_kernel(%arg0: i32, %arg1: memref<8x64xf32, #tpu.memory_space<vmem>>, %arg2: memref<64x128xbf16, #tpu.memory_space<vmem>>, %arg3: memref<1x128xf32, #tpu.memory_space<vmem>>, %arg4: memref<128x64xbf16, #tpu.memory_space<vmem>>, %arg5: memref<1x64xf32, #tpu.memory_space<vmem>>, %arg6: memref<64x32xbf16, #tpu.memory_space<vmem>>, %arg7: memref<1x32xf32, #tpu.memory_space<vmem>>, %arg8: memref<32x128xbf16, #tpu.memory_space<vmem>>, %arg9: memref<1x128xf32, #tpu.memory_space<vmem>>, %arg10: memref<8x128xf32, #tpu.memory_space<vmem>>) attributes {dimension_semantics = [#tpu.dimension_semantics<parallel>], iteration_bounds = array<i64: 2>, scalar_prefetch = 0 : i64, scratch_operands = 0 : i64, tpu.core_type = #tpu.core_type<tc>, window_params = [{transform_indices = @transform_0, window_bounds = array<i64: 8, 64>}, {pipeline_mode = #tpu.pipeline_mode<synchronous>, transform_indices = @transform_1, window_bounds = array<i64: 64, 128>}, {pipeline_mode = #tpu.pipeline_mode<synchronous>, transform_indices = @transform_2, window_bounds = array<i64: 1, 128>}, {pipeline_mode = #tpu.pipeline_mode<synchronous>, transform_indices = @transform_3, window_bounds = array<i64: 128, 64>}, {pipeline_mode = #tpu.pipeline_mode<synchronous>, transform_indices = @transform_4, window_bounds = array<i64: 1, 64>}, {pipeline_mode = #tpu.pipeline_mode<synchronous>, transform_indices = @transform_5, window_bounds = array<i64: 64, 32>}, {pipeline_mode = #tpu.pipeline_mode<synchronous>, transform_indices = @transform_6, window_bounds = array<i64: 1, 32>}, {pipeline_mode = #tpu.pipeline_mode<synchronous>, transform_indices = @transform_7, window_bounds = array<i64: 32, 128>}, {pipeline_mode = #tpu.pipeline_mode<synchronous>, transform_indices = @transform_8, window_bounds = array<i64: 1, 128>}, {transform_indices = @transform_9, window_bounds = array<i64: 8, 128>}]} {
    %c0 = arith.constant 0 : index
    %c0_0 = arith.constant 0 : index
    %0 = vector.load %arg1[%c0, %c0_0] : memref<8x64xf32, #tpu.memory_space<vmem>>, vector<8x64xf32>
    %1 = arith.truncf %0 : vector<8x64xf32> to vector<8x64xbf16>
    %c0_1 = arith.constant 0 : index
    %c0_2 = arith.constant 0 : index
    %2 = vector.load %arg2[%c0_1, %c0_2] : memref<64x128xbf16, #tpu.memory_space<vmem>>, vector<64x128xbf16>
    %cst = arith.constant dense<0.000000e+00> : vector<8x128xf32>
    %3 = tpu.matmul %1, %2, %cst {dimension_numbers = #tpu.dot_dimension_numbers<[1], [0], [0], [1], [0, 0, 1, 1], [], []>} : vector<8x64xbf16>, vector<64x128xbf16>, vector<8x128xf32> -> vector<8x128xf32>
    %c0_3 = arith.constant 0 : index
    %c0_4 = arith.constant 0 : index
    %4 = vector.load %arg3[%c0_3, %c0_4] : memref<1x128xf32, #tpu.memory_space<vmem>>, vector<1x128xf32>
    %5 = vector.broadcast %4 : vector<1x128xf32> to vector<8x128xf32>
    %6 = arith.addf %3, %5 : vector<8x128xf32>
    %cst_5 = arith.constant 0.000000e+00 : f32
    %7 = vector.broadcast %cst_5 : f32 to vector<8x128xf32>
    %8 = arith.maximumf %6, %7 : vector<8x128xf32>
    %9 = arith.truncf %8 : vector<8x128xf32> to vector<8x128xbf16>
    %c0_6 = arith.constant 0 : index
    %c0_7 = arith.constant 0 : index
    %10 = vector.load %arg4[%c0_6, %c0_7] : memref<128x64xbf16, #tpu.memory_space<vmem>>, vector<128x64xbf16>
    %cst_8 = arith.constant dense<0.000000e+00> : vector<8x64xf32>
    %11 = tpu.matmul %9, %10, %cst_8 {dimension_numbers = #tpu.dot_dimension_numbers<[1], [0], [0], [1], [0, 0, 1, 1], [], []>} : vector<8x128xbf16>, vector<128x64xbf16>, vector<8x64xf32> -> vector<8x64xf32>
    %c0_9 = arith.constant 0 : index
    %c0_10 = arith.constant 0 : index
    %12 = vector.load %arg5[%c0_9, %c0_10] : memref<1x64xf32, #tpu.memory_space<vmem>>, vector<1x64xf32>
    %13 = vector.broadcast %12 : vector<1x64xf32> to vector<8x64xf32>
    %14 = arith.addf %11, %13 : vector<8x64xf32>
    %cst_11 = arith.constant 0.000000e+00 : f32
    %15 = vector.broadcast %cst_11 : f32 to vector<8x64xf32>
    %16 = arith.maximumf %14, %15 : vector<8x64xf32>
    %17 = arith.truncf %16 : vector<8x64xf32> to vector<8x64xbf16>
    %c0_12 = arith.constant 0 : index
    %c0_13 = arith.constant 0 : index
    %18 = vector.load %arg6[%c0_12, %c0_13] : memref<64x32xbf16, #tpu.memory_space<vmem>>, vector<64x32xbf16>
    %cst_14 = arith.constant dense<0.000000e+00> : vector<8x32xf32>
    %19 = tpu.matmul %17, %18, %cst_14 {dimension_numbers = #tpu.dot_dimension_numbers<[1], [0], [0], [1], [0, 0, 1, 1], [], []>} : vector<8x64xbf16>, vector<64x32xbf16>, vector<8x32xf32> -> vector<8x32xf32>
    %c0_15 = arith.constant 0 : index
    %c0_16 = arith.constant 0 : index
    %20 = vector.load %arg7[%c0_15, %c0_16] : memref<1x32xf32, #tpu.memory_space<vmem>>, vector<1x32xf32>
    %21 = vector.broadcast %20 : vector<1x32xf32> to vector<8x32xf32>
    %22 = arith.addf %19, %21 : vector<8x32xf32>
    %cst_17 = arith.constant 0.000000e+00 : f32
    %23 = vector.broadcast %cst_17 : f32 to vector<8x32xf32>
    %24 = arith.maximumf %22, %23 : vector<8x32xf32>
    %25 = arith.truncf %24 : vector<8x32xf32> to vector<8x32xbf16>
    %c0_18 = arith.constant 0 : index
    %c0_19 = arith.constant 0 : index
    %26 = vector.load %arg8[%c0_18, %c0_19] : memref<32x128xbf16, #tpu.memory_space<vmem>>, vector<32x128xbf16>
    %cst_20 = arith.constant dense<0.000000e+00> : vector<8x128xf32>
    %27 = tpu.matmul %25, %26, %cst_20 {dimension_numbers = #tpu.dot_dimension_numbers<[1], [0], [0], [1], [0, 0, 1, 1], [], []>} : vector<8x32xbf16>, vector<32x128xbf16>, vector<8x128xf32> -> vector<8x128xf32>
    %c0_21 = arith.constant 0 : index
    %c0_22 = arith.constant 0 : index
    %28 = vector.load %arg9[%c0_21, %c0_22] : memref<1x128xf32, #tpu.memory_space<vmem>>, vector<1x128xf32>
    %29 = vector.broadcast %28 : vector<1x128xf32> to vector<8x128xf32>
    %30 = arith.addf %27, %29 : vector<8x128xf32>
    %cst_23 = arith.constant 0.000000e+00 : f32
    %31 = vector.broadcast %cst_23 : f32 to vector<8x128xf32>
    %32 = arith.subf %31, %30 : vector<8x128xf32>
    %33 = math.exp %32 : vector<8x128xf32>
    %cst_24 = arith.constant 1.000000e+00 : f32
    %34 = vector.broadcast %cst_24 : f32 to vector<8x128xf32>
    %35 = arith.addf %34, %33 : vector<8x128xf32>
    %36 = tpu.reciprocal %35 {approx = true} : vector<8x128xf32> -> vector<8x128xf32>
    %c0_25 = arith.constant 0 : index
    %c0_26 = arith.constant 0 : index
    %37 = vector.load %arg10[%c0_25, %c0_26] : memref<8x128xf32, #tpu.memory_space<vmem>>, vector<8x128xf32>
    tpu.vector_store %arg10[%c0_25, %c0_26], %36 {strides = array<i32>} : memref<8x128xf32, #tpu.memory_space<vmem>>, vector<8x128xf32>,
    return
  }
  func.func @transform_0(%arg0: i32) -> (i32, i32) {
    %c0_i32 = arith.constant 0 : i32
    %c0_i32_0 = arith.constant 0 : i32
    return %arg0, %c0_i32 : i32, i32
  }
  func.func @transform_1(%arg0: i32) -> (i32, i32) {
    %c0_i32 = arith.constant 0 : i32
    %c0_i32_0 = arith.constant 0 : i32
    %c0_i32_1 = arith.constant 0 : i32
    return %c0_i32, %c0_i32_0 : i32, i32
  }
  func.func @transform_2(%arg0: i32) -> (i32, i32) {
    %c0_i32 = arith.constant 0 : i32
    %c0_i32_0 = arith.constant 0 : i32
    %c0_i32_1 = arith.constant 0 : i32
    return %c0_i32, %c0_i32_0 : i32, i32
  }
  func.func @transform_3(%arg0: i32) -> (i32, i32) {
    %c0_i32 = arith.constant 0 : i32
    %c0_i32_0 = arith.constant 0 : i32
    %c0_i32_1 = arith.constant 0 : i32
    return %c0_i32, %c0_i32_0 : i32, i32
  }
  func.func @transform_4(%arg0: i32) -> (i32, i32) {
    %c0_i32 = arith.constant 0 : i32
    %c0_i32_0 = arith.constant 0 : i32
    %c0_i32_1 = arith.constant 0 : i32
    return %c0_i32, %c0_i32_0 : i32, i32
  }
  func.func @transform_5(%arg0: i32) -> (i32, i32) {
    %c0_i32 = arith.constant 0 : i32
    %c0_i32_0 = arith.constant 0 : i32
    %c0_i32_1 = arith.constant 0 : i32
    return %c0_i32, %c0_i32_0 : i32, i32
  }
  func.func @transform_6(%arg0: i32) -> (i32, i32) {
    %c0_i32 = arith.constant 0 : i32
    %c0_i32_0 = arith.constant 0 : i32
    %c0_i32_1 = arith.constant 0 : i32
    return %c0_i32, %c0_i32_0 : i32, i32
  }
  func.func @transform_7(%arg0: i32) -> (i32, i32) {
    %c0_i32 = arith.constant 0 : i32
    %c0_i32_0 = arith.constant 0 : i32
    %c0_i32_1 = arith.constant 0 : i32
    return %c0_i32, %c0_i32_0 : i32, i32
  }
  func.func @transform_8(%arg0: i32) -> (i32, i32) {
    %c0_i32 = arith.constant 0 : i32
    %c0_i32_0 = arith.constant 0 : i32
    %c0_i32_1 = arith.constant 0 : i32
    return %c0_i32, %c0_i32_0 : i32, i32
  }
  func.func @transform_9(%arg0: i32) -> (i32, i32) {
    %c0_i32 = arith.constant 0 : i32
    %c0_i32_0 = arith.constant 0 : i32
    return %arg0, %c0_i32 : i32, i32
  }
}

</mosaic_0001>

<bundles_post_ra>
// kernel: tpu_custom_call.1
= control target key start
LH: loop header
LB: loop body
LE: loop exit
PB: predicated region body
PF: predicated region fallthrough
CT: control target
= control target key end

     0   :  { %14 = vsyncpa [#allocation3], 0  ;;  %s1058_s0 = inlined_call_operand.vmem [shape: f32[16,64], index: 0, kind: input, shape index: {}]   ;;  %s1059_s1 = inlined_call_operand.vmem [shape: bf16[64,128], index: 1, kind: input, shape index: {}]   ;;  %s1060_s2 = inlined_call_operand.vmem [shape: f32[1,128], index: 2, kind: input, shape index: {}]   ;;  %s1061_s3 = inlined_call_operand.vmem [shape: bf16[128,64], index: 3, kind: input, shape index: {}]   ;;  %s1062_s4 = inlined_call_operand.vmem [shape: f32[1,64], index: 4, kind: input, shape index: {}]   ;;  %s1063_s5 = inlined_call_operand.vmem [shape: bf16[64,32], index: 5, kind: input, shape index: {}]   ;;  %s1064_s6 = inlined_call_operand.vmem [shape: f32[1,32], index: 6, kind: input, shape index: {}]   ;;  %s1065_s7 = inlined_call_operand.vmem [shape: bf16[32,128], index: 7, kind: input, shape index: {}]   ;;  %s1066_s8 = inlined_call_operand.vmem [shape: f32[1,128], index: 8, kind: input, shape index: {}]   ;;  %s1067_s9 = inlined_call_operand.hbm [shape: f32[16,128], index: 9, kind: output, shape index: {}]  }
   0x1   :  { %16 = vsyncpa [#allocation3 + $0x1], 0  ;;  %s905_s30 = smov 0   ;;  %s907_s10 = smov 0  }
   0x2   :  { %s909_s11 = smov 0   ;;  %s911_s12 = smov 0  }
   0x3 LB: > { %s926_s13 = sadd.s32 4294967295, %s853_s12   ;;  %s641_s14 = sadd.s32 4294967294, %s853_s12   ;;  %s853_s12 = sphi %s911_s12, %s1075_s12   ;;  %s849_s11 = sphi %s909_s11, %s1074_s11   ;;  %s845_s10 = sphi %s907_s10, %s1073_s10   ;;  %s841_s30 = sphi %s905_s30, %s1072_s30  }
   0x4   : > { %s930_s15 = sadd.s32 1, %s853_s12   ;;  %s223_s16 = sadd.s32 1, %s849_s11 }
   0x5   : > { %s220_s17 = ssub.s32 %s853_s12, %s930_s15  ;;  %p233_p0 = scmp.ne.s32.totalorder %s849_s11, %s845_s10 }
   0x6   : > { %p221_p1 = scmp.eq.s32.totalorder %s220_s17, 0  ;;  %p234_p2 = scmp.eq.s32.totalorder %s926_s13, 1 }
   0x7   : > { %p239_p3 = scmp.ne.s32.totalorder %s845_s10, %s841_s30  ;;  %p240_p4 = scmp.eq.s32.totalorder %s641_s14, 1 }
   0x8   : > { %s941_s18 = scalar_select %p221_p1, %s849_s11, %s223_s16  }
   0x9   : > { %p943_p5 = por %p234_p2, %p233_p0  ;;  %p947_p6 = por %p240_p4, %p239_p3 }
   0xa   : > { %1068 = sst [smem:[#allocation5_spill]] %s941_s18  ;;  %p644_p7 = scmp.ge.s32.totalorder %s853_s12, 1 }
   0xb   : > { %p289_p8 = scmp.lt.s32.totalorder %s853_s12, 3 }
   0xd   : > { %p290_p9 = pnand %p644_p7, %p289_p8 }
   0xe   : > { %p324_p10 = scmp.lt.s32.totalorder (!%p290_p9), %s926_s13, 1  ;;  %s321_s16 = sand.u32 (!%p290_p9), 1, %s845_s10  }
   0xf   : > { %293 = sbr.rel (%p290_p9) target bundleno = 595 (0x253), region = 56  ;;  %s645_s18 = sshll.u32 (!%p290_p9), %s321_s16, 3 }
  0x10   : > { %s723_s17 = sshll.u32 (!%p290_p9), %s926_s13, 3  ;;  %s323_s24 = scalar_lea.vmem (!%p290_p9), [#allocation2], %s645_s18 }
  0x11   : > { %s579_s25 = sshll.u32 (!%p290_p9), %s323_s24, 4  ;;  %s580_s25 = int_to_ptr.vmem [resolvable:$true] %s579_s25 }
  0x14   : > { %v729_v0 = vld [vmem:[%s1059_s1 + $0x18] sm:$0xff]  ;;  %v728_v2 = vld [vmem:[%s1059_s1 + $0x10] sm:$0xff]  ;;  %s325_s27 = scalar_select %p324_p10, %s926_s13, 1  ;;  %v727_v4 = vld [vmem:[%s1059_s1 + $0x8] sm:$0xff]  ;;  %vm367_vm0 = vcmask 523264   ;;  %vm543_vm1 = vcmask 261120  }
  0x15   : > { %v737_v1 = vld [vmem:[%s1061_s3 + $0x38] sm:$0xff]  ;;  %375 = vmatpush.bf16.msra.mxu0 %v729_v0  ;;  %v736_v3 = vld [vmem:[%s1061_s3 + $0x30] sm:$0xff]  ;;  %v735_v5 = vld [vmem:[%s1061_s3 + $0x28] sm:$0xff] }
  0x16   : > { %454 = vmatpush.bf16.msra.mxu1 %v737_v1  ;;  %s646_s14 = sshll.u32 %s325_s27, 3  ;;  %v726_v6 = vld [vmem:[%s1059_s1] sm:$0xff]  ;;  %v733_v10 = vld [vmem:[%s1061_s3 + $0x18] sm:$0xff]  ;;  %v732_v11 = vld [vmem:[%s1061_s3 + $0x10] sm:$0xff]  ;;  %s567_s27 = scalar_lea.sflag [#allocation3], %s321_s16 }
  0x17   : > { %s327_s23 = scalar_lea.vmem %s1058_s0, %s646_s14  ;;  %v734_v8 = vld [vmem:[%s1061_s3 + $0x20] sm:$0xff]  ;;  %v731_v12 = vld [vmem:[%s1061_s3 + $0x8] sm:$0xff]  ;;  %v741_v14 = vld [vmem:[%s1063_s5 + $0x18] sm:$0xff] }
  0x18   : > { %v329_v7 = vld [vmem:[%s327_s23] sm:$0xff]  ;;  %512 = vmatpush.bf16.msra.mxu2 %v741_v14  ;;  %v740_v15 = vld [vmem:[%s1063_s5 + $0x10] sm:$0xff]  ;;  %v739_v22 = vld [vmem:[%s1063_s5 + $0x8] sm:$0xff]  ;;  %s577_s23 = scalar_lea.hbm %s1067_s9, %s723_s17  ;;  %s811_s17 = scalar_lea.hbm %s1067_s9, 16 }
  0x19   : > { %376 = vmatpush.bf16.msra.mxu0 %v728_v2  ;;  %v330_v9 = vpack.c.bf16 %v329_v7, %v329_v7  ;;  %v730_v13 = vld [vmem:[%s1061_s3] sm:$0xff]  ;;  %v743_v30 = vld [vmem:[%s1065_s7 + $0x8] sm:$0xff]  ;;  %s581_s26 = sshll.u32 %s577_s23, 4  ;;  %s582_s26 = int_to_ptr.hbm [resolvable:$true] %s581_s26 }
  0x1a   : > { %455 = vmatpush.bf16.msra.mxu1 %v736_v3  ;;  %v783_v16 = vld [vmem:[%s1060_s2] ss:$0 sm:$0xff]  ;;  %553 = vmatpush.bf16.msra.mxu3 %v743_v30  ;;  %s805_s28 = sshra.s32 %s582_s26, 4  ;;  %s806_s28 = int_to_ptr.hbm [resolvable:$true] %s805_s28 }
  0x1b   : > { %v738_v23 = vld [vmem:[%s1063_s5] sm:$0xff]  ;;  %s807_s29 = scalar_lea.hbm %s806_s28, 8  ;;  %p812_p0 = scmp.lt.s32.totalorder %s806_s28, %s1067_s9 }
  0x1c   : > { %513 = vmatpush.bf16.msra.mxu2 %v740_v15  ;;  %v784_v24 = vld [vmem:[%s1062_s4] ss:$0 sm:$0xff]  ;;  %p808_p11 = scmp.ne.s32.totalorder %s806_s28, %s807_s29  ;;  %p813_p1 = scmp.lt.s32.totalorder %s811_s17, %s807_s29 }
  0x1d   : > { %377 = vmatpush.bf16.msra.mxu0 %v727_v4  ;;  %v742_v31 = vld [vmem:[%s1065_s7] sm:$0xff] }
  0x1e   : > { %456 = vmatpush.bf16.msra.mxu1 %v735_v5  ;;  %554 = vmatpush.bf16.msra.mxu3 %v742_v31  ;;  %v785_v32 = vld [vmem:[%s1064_s6] ss:$0 sm:$0xff]  ;;  %p809_p12 = pnand %p808_p11, %p943_p5  ;;  %p814_p2 = por %p813_p1, %p812_p0 }
  0x1f   : > { %v786_v38 = vld [vmem:[%s1066_s8] ss:$0 sm:$0xff] }
  0x20   : > { %514 = vmatpush.bf16.msra.mxu2 %v739_v22  ;;  %p810_p13 = pneg %p809_p12 }
  0x21   : > { %378 = vmatpush.bf16.msra.mxu0 %v726_v6 }
  0x22   : > { %457 = vmatpush.bf16.msra.mxu1 %v734_v8  ;;  %p815_p3 = pnand %p814_p2, %p810_p13 }
  0x24   : > { %663 = vmatmul.msk.bf16.vlgmr.msra.gmra.mxu0 %vm367_vm0, %v330_v9  ;;  %515 = vmatpush.bf16.msra.mxu2 %v738_v23 }
  0x26   : > { %458 = vmatpush.bf16.msra.mxu1 %v733_v10 }
  0x2a   : > { %459 = vmatpush.bf16.msra.mxu1 %v732_v11 }
  0x2e   : > { %460 = vmatpush.bf16.msra.mxu1 %v731_v12 }
  0x32   : > { %461 = vmatpush.bf16.msra.mxu1 %v730_v13 }
  0xa1   : > { %v380_v17 = vpop.f32.mrf.mxu0 }
  0xa2   : > { %v381_v18 = vadd.f32 %v783_v16, %v380_v17 }
  0xa4   : > { %v384_v19 = vmax.f32 %v381_v18, 0.0 }
  0xa6   : > { %v385_v20 = vpack.c.bf16 %v384_v19, %v384_v19 }
  0xa8   : > { %462 = vmatmul.bf16.vlgmr.msra.gmra.mxu1 %v385_v20 }
  0xa9   : > { %v382_v21 = vpop.f32.mrf.mxu0 }
 0x125   : > { %v463_v25 = vpop.f32.mrf.mxu1 }
 0x126   : > { %v464_v26 = vadd.f32 %v784_v24, %v463_v25 }
 0x128   : > { %v467_v27 = vmax.f32 %v464_v26, 0.0 }
 0x12a   : > { %v468_v28 = vpack.c.bf16 %v467_v27, %v467_v27 }
 0x12c   : > { %712 = vmatmul.msk.bf16.vlgmr.msra.gmra.mxu2 %vm367_vm0, %v468_v28 }
 0x12d   : > { %v465_v29 = vpop.f32.mrf.mxu1 }
 0x1af   : > { %v517_v33 = vpop.f32.mrf.mxu2 }
 0x1b0   : > { %v518_v34 = vadd.f32 %v785_v32, %v517_v33 }
 0x1b2   : > { %v521_v35 = vmax.f32 %v518_v34, 0.0 }
 0x1b4   : > { %v522_v36 = vpack.c.bf16 %v521_v35, %v521_v35 }
 0x1b6   : > { %721 = vmatmul.msk.bf16.vlgmr.msra.gmra.mxu3 %vm543_vm1, %v522_v36 }
 0x1b7   : > { %v519_v37 = vpop.f32.mrf.mxu2 }
 0x239   : > { %v556_v39 = vpop.f32.mrf.mxu3 }
 0x23a   : > { %v557_v40 = vadd.f32 %v786_v38, %v556_v39 }
 0x23c   : > { %v560_v41 = vsub.f32 0.0, %v557_v40 }
 0x23e   : > { %v561_v42 = vmul.f32 1.442695, %v560_v41 }
 0x240   : > { %787 = vpow2.f32 %v561_v42 }
 0x241   : > { %v558_v43 = vpop.f32.mrf.mxu3 }
 0x246   : > { %v788_v44 = vpop.eup %787 }
 0x247   : > { %v563_v45 = vadd.f32 1.0, %v788_v44 }
 0x249   : > { %789 = vrcp.f32 %v563_v45 }
 0x24f   : > { %v790_v46 = vpop.eup %789 }
 0x250   : > { %565 = vst [vmem:[%s323_s24] sm:$0xff] %v790_v46 }
 0x251   : > { %818 = shalt.err (!%p815_p3)
}
 0x252   : > { %744 = dma.vmem_to_hbm [thread:$0]  (%p943_p5), %s580_s25, 128, %s582_s26, %s567_s27  }
 0x253 PF: > { %p750_p4 = scmp.ge.s32.totalorder %s853_s12, 2  ;;  %s593_s16 = sand.u32 1, %s841_s30  }
 0x254   : > { %s594_s22 = scalar_lea.sflag [#allocation3], %s593_s16 }
 0x255   : > { %p747_p7 = pnand %p750_p4, %p947_p6 }
 0x257   : > { %p748_p8 = pneg %p747_p7 }
 0x259   : > { %836 = dma.done.wait (%p748_p8), %s594_s22, 128  }
 0x25a   : > { %838 = vsyncadd (%p748_p8), %s594_s22, 4294967168  ;;  %s1071_s23 = sld [smem:[#allocation5_spill]]  ;;  %p19_p9 = scmp.ge.s32.totalorder %s930_s15, 4  }
 0x25b   : > { %s1072_s30 = smov %s845_s10  ;;  %s1073_s10 = smov %s849_s11 }
 0x25c   : > { %s1075_s12 = smov %s930_s15  ;;  %21 = sbr.rel (!%p19_p9) target bundleno = 3 (0x3), region = 91 }
 0x260   : > { %s1074_s11 = smov %s1071_s23 }
 0x261   :  { %600 = vsyncpa [#allocation3], 1 }
 0x262   :  { %602 = vsyncpa [#allocation3 + $0x1], 1 }

</bundles_post_ra>
